<compile_context>
chip_gen: v6e
topology: v6e:2x2x1
jax: 0.10.0
libtpu: 0.0.40
codegen_flags: <defaults>
</compile_context>

<pallas_src>
import functools

import jax
import jax.numpy as jnp
from jax.experimental import pallas as pl
from jax.experimental.pallas import tpu as pltpu

_LANE = 128


def _round_up(v, m):
    return ((v + m - 1) // m) * m


def _tpu_vmem_capacity_bytes():
    """Physical VMEM per TensorCore; conservative fallback if the query fails."""
    try:
        cap = int(pltpu.get_tpu_info().vmem_capacity_bytes)
        if cap > 0:
            return cap
    except Exception:
        pass
    return 64 << 20   # v7x-sized (smallest current part) -> always a safe assumption


# --------------------------------------------------------------------------
# Single-pass kernel: whole (C, HW) feature map per sample, nb samples/block.
# --------------------------------------------------------------------------
def _gct_single_pass_kernel(x_ref, params_ref, o_ref, *, epsilon):
    # x_ref:      (nb, C, HW)  -- HW is the true, unpadded spatial size
    # params_ref: (3, C, 1) f32 = [alpha, gamma, beta], C on the sublane axis
    p = params_ref[...]
    alpha, gamma, beta = p[0:1], p[1:2], p[2:3]                 # each (1, C, 1)

    xf = x_ref[...].astype(jnp.float32)
    sum_sq = jnp.sum(xf * xf, axis=-1, keepdims=True)           # (nb, C, 1)

    # embedding = sqrt(sum_{hw} x^2 + eps) * alpha
    embedding = jnp.sqrt(sum_sq + epsilon) * alpha
    # norm = gamma * rsqrt(mean_c(embedding^2) + eps)   (EUP rsqrt, free slot)
    mean_e2 = jnp.mean(embedding * embedding, axis=1, keepdims=True)
    norm = gamma * jax.lax.rsqrt(mean_e2 + epsilon)
    # gate = 1 + tanh(embedding * norm + beta)
    gate = 1.0 + jnp.tanh(embedding * norm + beta)              # (nb, C, 1) f32

    # Re-read x for the store path (keeps the big f32 temp short-lived).
    # Multiply in the input dtype: exact for f32; for bf16 this rounds the
    # gate to bf16 first (tiny precision delta vs. the f32 reference).
    x = x_ref[...]
    o_ref[...] = (x * gate.astype(x.dtype)).astype(o_ref.dtype)


# --------------------------------------------------------------------------
# Two-pass fallback for very large C*HW (single sample does not fit VMEM).
# --------------------------------------------------------------------------
def _gct_sumsq_kernel(x_ref, ss_ref, *, hw, thw):
    # grid = (N, n_hw); hw axis is the (arbitrary) accumulation axis.
    h = pl.program_id(1)

    @pl.when(h == 0)
    def _():
        ss_ref[...] = jnp.zeros_like(ss_ref)

    xf = x_ref[...].astype(jnp.float32)                         # (1, C, thw)
    # Mask the ragged tail of the last spatial tile (block may overhang HW;
    # the padded region of the block is undefined, so force it to zero).
    col = jax.lax.broadcasted_iota(jnp.int32, xf.shape, 2) + h * thw
    xf = jnp.where(col < hw, xf, 0.0)
    ss_ref[...] += jnp.sum(xf * xf, axis=-1, keepdims=True)


def _gct_apply_gate_kernel(x_ref, gate_ref, o_ref):
    x = x_ref[...]                                              # (1, C, thw)
    g = gate_ref[...].astype(x.dtype)                           # (1, C, 1)
    o_ref[...] = (x * g).astype(o_ref.dtype)                    # ragged tail write is masked


# --------------------------------------------------------------------------
# Wrapper
# --------------------------------------------------------------------------
def gct_forward(x_nchw, alpha, gamma, beta, *, epsilon=1e-5,
                force_two_pass=False, batch_tile=None, hw_tile=None):
    """GCT forward (mode='l2').  x_nchw: (N,C,H,W); params: (1,C,1,1)."""
    # TODO(synk): only mode='l2' (the module default) is implemented; the 'l1'
    # branch of the PyTorch module is not translated.
    N, C, H, W = x_nchw.shape
    HW = H * W
    dtype = x_nchw.dtype
    itemsize = jnp.dtype(dtype).itemsize

    # --- generation-aware budgets ---
    vmem_cap = _tpu_vmem_capacity_bytes()
    small_vmem = vmem_cap <= (65 << 20)        # v7x-like: 64 MiB VMEM, 2 TensorCores
    vmem_limit = int(min(max(vmem_cap * 4 // 5, 32 << 20), 100 << 20))
    vmem_budget = vmem_limit - (4 << 20)       # headroom for params/scalars/etc.
    block_target = (4 << 20) if small_vmem else (2 << 20)
    min_grid = min(N, 4) if small_vmem else 1  # keep both v7x TCs pipelined (>=2 steps each)

    # Params packed once: (3, C, 1) f32 with C on the sublane axis, matching
    # the layout of the (.., C, 1) reduction results (no per-step relayout).
    params = jnp.stack(
        [alpha.reshape(C), gamma.reshape(C), beta.reshape(C)]
    ).astype(jnp.float32).reshape(3, C, 1)

    x = x_nchw.reshape(N, C, HW)

    # Per-sample footprints: streaming bytes (HBM) vs. VMEM bytes (in + out
    # double-buffered at input width, plus one f32 temporary for the reduce).
    per_sample_stream = C * HW * itemsize
    per_sample_vmem = C * _round_up(HW, _LANE) * (4 * itemsize + 4)

    use_single = (not force_two_pass) and per_sample_vmem <= vmem_budget

    if use_single:
        if batch_tile is None:
            nb = max(1, min(block_target // max(per_sample_stream, 1), N))
            nb = min(nb, max(1, vmem_budget // max(per_sample_vmem, 1)))
            if min_grid > 1:
                nb = min(nb, max(1, N // min_grid))
        else:
            nb = max(1, min(int(batch_tile), N))
        grid = pl.cdiv(N, nb)   # ragged last block is fine: all math is per-sample

        kernel = functools.partial(_gct_single_pass_kernel, epsilon=epsilon)
        out = pl.pallas_call(
            kernel,
            out_shape=jax.ShapeDtypeStruct((N, C, HW), dtype),
            grid_spec=pl.GridSpec(
                grid=(grid,),
                in_specs=[
                    pl.BlockSpec((nb, C, HW), lambda n: (n, 0, 0)),
                    pl.BlockSpec((3, C, 1), lambda n: (0, 0, 0)),
                ],
                out_specs=pl.BlockSpec((nb, C, HW), lambda n: (n, 0, 0)),
            ),
            compiler_params=pltpu.CompilerParams(
                dimension_semantics=("parallel",),
                vmem_limit_bytes=vmem_limit),
            cost_estimate=pl.CostEstimate(
                flops=3 * N * C * HW,
                transcendentals=2 * N * C,
                bytes_accessed=2 * N * C * HW * itemsize),
        )(x, params)
    else:
        # ---- two-pass path: tile the spatial axis, ~block_target per block ----
        if hw_tile is None:
            thw = max(_LANE,
                      (block_target // max(C * itemsize, 1)) // _LANE * _LANE)
        else:
            thw = max(_LANE, (int(hw_tile) // _LANE) * _LANE)
        hw_ceil = _round_up(HW, _LANE)
        thw2 = min(thw, hw_ceil)               # pass 2: in + out double-buffered
        thw1 = min(2 * thw2, hw_ceil)          # pass 1 has no big output -> 2x tile
        n_hw1 = pl.cdiv(HW, thw1)
        n_hw2 = pl.cdiv(HW, thw2)

        # Pass 1: per-channel sum of squares over the spatial axis.
        sum_sq = pl.pallas_call(
            functools.partial(_gct_sumsq_kernel, hw=HW, thw=thw1),
            out_shape=jax.ShapeDtypeStruct((N, C, 1), jnp.float32),
            grid_spec=pl.GridSpec(
                grid=(N, n_hw1),
                in_specs=[pl.BlockSpec((1, C, thw1), lambda n, h: (n, 0, h))],
                out_specs=pl.BlockSpec((1, C, 1), lambda n, h: (n, 0, 0)),
            ),
            compiler_params=pltpu.CompilerParams(
                dimension_semantics=("parallel", "arbitrary"),
                vmem_limit_bytes=vmem_limit),
            cost_estimate=pl.CostEstimate(
                flops=2 * N * C * HW,
                transcendentals=0,
                bytes_accessed=N * C * HW * itemsize + N * C * 4),
        )(x)

        # Tiny O(N*C) gate math between the two streaming passes (plain JAX).
        alpha_f, gamma_f, beta_f = params[0:1], params[1:2], params[2:3]
        embedding = jnp.sqrt(sum_sq + epsilon) * alpha_f                 # (N, C, 1)
        mean_e2 = jnp.mean(embedding * embedding, axis=1, keepdims=True)
        norm = gamma_f * jax.lax.rsqrt(mean_e2 + epsilon)
        gate = (1.0 + jnp.tanh(embedding * norm + beta_f)).astype(jnp.float32)

        # Pass 2: re-stream x and apply the per-channel gate.
        out = pl.pallas_call(
            _gct_apply_gate_kernel,
            out_shape=jax.ShapeDtypeStruct((N, C, HW), dtype),
            grid_spec=pl.GridSpec(
                grid=(N, n_hw2),
                in_specs=[
                    pl.BlockSpec((1, C, thw2), lambda n, h: (n, 0, h)),
                    pl.BlockSpec((1, C, 1), lambda n, h: (n, 0, 0)),
                ],
                out_specs=pl.BlockSpec((1, C, thw2), lambda n, h: (n, 0, h)),
            ),
            compiler_params=pltpu.CompilerParams(
                dimension_semantics=("parallel", "parallel"),
                vmem_limit_bytes=vmem_limit),
            cost_estimate=pl.CostEstimate(
                flops=N * C * HW,
                transcendentals=2 * N * C,
                bytes_accessed=2 * N * C * HW * itemsize),
        )(x, gate)

    return out.reshape(N, C, H, W)


def gct_reference(x, alpha, gamma, beta, epsilon=1e-5):
    # Pure-JAX reference mirroring the PyTorch forward (mode='l2').
    embedding = jnp.sqrt(jnp.sum(x ** 2, axis=(2, 3), keepdims=True) + epsilon) * alpha
    norm = gamma / jnp.sqrt(jnp.mean(embedding ** 2, axis=1, keepdims=True) + epsilon)
    gate = 1.0 + jnp.tanh(embedding * norm + beta)
    return x * gate


def _make_params(keys, C):
    alpha = jnp.ones((1, C, 1, 1), jnp.float32) + 0.1 * jax.random.normal(keys[0], (1, C, 1, 1))
    gamma = 0.5 * jax.random.normal(keys[1], (1, C, 1, 1), dtype=jnp.float32)
    beta = 0.1 * jax.random.normal(keys[2], (1, C, 1, 1), dtype=jnp.float32)
    return alpha, gamma, beta


if __name__ == "__main__":
    key = jax.random.PRNGKey(0)
    keys = jax.random.split(key, 16)

    # --- test 1: baseline small feature map (HW multiple of 128), single-pass ---
    N, C, H, W = 2, 4, 16, 16
    x = jax.random.normal(keys[0], (N, C, H, W), dtype=jnp.float32)
    a1, g1, b1 = _make_params(keys[1:4], C)
    out = jax.block_until_ready(gct_forward(x, a1, g1, b1))
    ref = gct_reference(x, a1, g1, b1)
    assert out.shape == (N, C, H, W)
    assert jnp.allclose(out, ref, atol=1e-5, rtol=1e-5), "single-pass mismatch"

    # --- test 2: HW NOT a multiple of 128 (no-pad path, masked tail store) ---
    x2 = jax.random.normal(keys[4], (2, 4, 10, 10), dtype=jnp.float32)
    a2, g2, b2 = _make_params(keys[5:8], 4)
    out2 = jax.block_until_ready(gct_forward(x2, a2, g2, b2))
    ref2 = gct_reference(x2, a2, g2, b2)
    assert jnp.allclose(out2, ref2, atol=1e-5, rtol=1e-5), "non-128 HW mismatch"

    # --- test 3: ragged batch grid (N=3, batch_tile=2 -> cdiv grid of 2) ---
    x3 = jax.random.normal(keys[8], (3, 4, 8, 8), dtype=jnp.float32)
    a3, g3, b3 = _make_params(keys[9:12], 4)
    out3 = jax.block_until_ready(gct_forward(x3, a3, g3, b3, batch_tile=2))
    ref3 = gct_reference(x3, a3, g3, b3)
    assert jnp.allclose(out3, ref3, atol=1e-5, rtol=1e-5), "ragged-batch mismatch"

    # --- test 4: two-pass fallback with ragged spatial tiles (HW=400) ---
    x4 = jax.random.normal(keys[12], (2, 8, 20, 20), dtype=jnp.float32)
    a4, g4, b4 = _make_params(keys[13:16], 8)
    out4 = jax.block_until_ready(
        gct_forward(x4, a4, g4, b4, force_two_pass=True, hw_tile=128))
    ref4 = gct_reference(x4, a4, g4, b4)
    assert jnp.allclose(out4, ref4, atol=1e-5, rtol=1e-5), "two-pass mismatch"

    # --- test 5: bf16 input (gate applied in bf16; compare against f32 ref) ---
    x5 = x.astype(jnp.bfloat16)
    out5 = jax.block_until_ready(gct_forward(x5, a1, g1, b1))
    ref5 = gct_reference(x5.astype(jnp.float32), a1, g1, b1)
    assert jnp.allclose(out5.astype(jnp.float32), ref5, atol=5e-2, rtol=5e-2), "bf16 mismatch"

    print("KERNEL_OK")
</pallas_src>

<mosaic_0001>
module attributes {stable_mosaic.version = 11 : i64} {
  func.func @_gct_single_pass_kernel(%arg0: i32, %arg1: memref<1x4x256xf32, #tpu.memory_space<vmem>>, %arg2: memref<3x4x1xf32, #tpu.memory_space<vmem>>, %arg3: memref<1x4x256xf32, #tpu.memory_space<vmem>>) attributes {dimension_semantics = [#tpu.dimension_semantics<parallel>], iteration_bounds = array<i64: 2>, scalar_prefetch = 0 : i64, scratch_operands = 0 : i64, tpu.core_type = #tpu.core_type<tc>, window_params = [{transform_indices = @transform_0, window_bounds = array<i64: 1, 4, 256>}, {pipeline_mode = #tpu.pipeline_mode<synchronous>, transform_indices = @transform_1, window_bounds = array<i64: 3, 4, 1>}, {transform_indices = @transform_2, window_bounds = array<i64: 1, 4, 256>}]} {
    %c0 = arith.constant 0 : index
    %c0_0 = arith.constant 0 : index
    %c0_1 = arith.constant 0 : index
    %0 = vector.load %arg2[%c0, %c0_0, %c0_1] : memref<3x4x1xf32, #tpu.memory_space<vmem>>, vector<3x4x1xf32>
    %1 = vector.extract_strided_slice %0 {offsets = [0, 0, 0], sizes = [1, 4, 1], strides = [1, 1, 1]} : vector<3x4x1xf32> to vector<1x4x1xf32>
    %2 = vector.extract_strided_slice %0 {offsets = [1, 0, 0], sizes = [1, 4, 1], strides = [1, 1, 1]} : vector<3x4x1xf32> to vector<1x4x1xf32>
    %3 = vector.extract_strided_slice %0 {offsets = [2, 0, 0], sizes = [1, 4, 1], strides = [1, 1, 1]} : vector<3x4x1xf32> to vector<1x4x1xf32>
    %c0_2 = arith.constant 0 : index
    %c0_3 = arith.constant 0 : index
    %c0_4 = arith.constant 0 : index
    %4 = vector.load %arg1[%c0_2, %c0_3, %c0_4] : memref<1x4x256xf32, #tpu.memory_space<vmem>>, vector<1x4x256xf32>
    %5 = arith.mulf %4, %4 : vector<1x4x256xf32>
    %cst = arith.constant dense<0.000000e+00> : vector<1x4xf32>
    %6 = vector.multi_reduction <add>, %5, %cst [2] : vector<1x4x256xf32> to vector<1x4xf32>
    %7 = vector.shape_cast %6 : vector<1x4xf32> to vector<1x4x1xf32>
    %cst_5 = arith.constant 9.99999974E-6 : f32
    %8 = vector.broadcast %cst_5 : f32 to vector<1x4x1xf32>
    %9 = arith.addf %7, %8 : vector<1x4x1xf32>
    %10 = math.sqrt %9 : vector<1x4x1xf32>
    %11 = arith.mulf %10, %1 : vector<1x4x1xf32>
    %12 = arith.mulf %11, %11 : vector<1x4x1xf32>
    %cst_6 = arith.constant dense<0.000000e+00> : vector<1x1xf32>
    %13 = vector.multi_reduction <add>, %12, %cst_6 [1] : vector<1x4x1xf32> to vector<1x1xf32>
    %14 = vector.shape_cast %13 : vector<1x1xf32> to vector<1x1x1xf32>
    %cst_7 = arith.constant 4.000000e+00 : f32
    %15 = vector.broadcast %cst_7 : f32 to vector<1x1x1xf32>
    %16 = arith.divf %14, %15 : vector<1x1x1xf32>
    %cst_8 = arith.constant 9.99999974E-6 : f32
    %17 = vector.broadcast %cst_8 : f32 to vector<1x1x1xf32>
    %18 = arith.addf %16, %17 : vector<1x1x1xf32>
    %19 = math.rsqrt %18 : vector<1x1x1xf32>
    %20 = vector.broadcast %19 : vector<1x1x1xf32> to vector<1x4x1xf32>
    %21 = arith.mulf %2, %20 : vector<1x4x1xf32>
    %22 = arith.mulf %11, %21 : vector<1x4x1xf32>
    %23 = arith.addf %22, %3 : vector<1x4x1xf32>
    %24 = math.tanh %23 : vector<1x4x1xf32>
    %cst_9 = arith.constant 1.000000e+00 : f32
    %25 = vector.broadcast %cst_9 : f32 to vector<1x4x1xf32>
    %26 = arith.addf %25, %24 : vector<1x4x1xf32>
    %c0_10 = arith.constant 0 : index
    %c0_11 = arith.constant 0 : index
    %c0_12 = arith.constant 0 : index
    %27 = vector.load %arg1[%c0_10, %c0_11, %c0_12] : memref<1x4x256xf32, #tpu.memory_space<vmem>>, vector<1x4x256xf32>
    %28 = vector.broadcast %26 : vector<1x4x1xf32> to vector<1x4x256xf32>
    %29 = arith.mulf %27, %28 : vector<1x4x256xf32>
    %c0_13 = arith.constant 0 : index
    %c0_14 = arith.constant 0 : index
    %c0_15 = arith.constant 0 : index
    %30 = vector.load %arg3[%c0_13, %c0_14, %c0_15] : memref<1x4x256xf32, #tpu.memory_space<vmem>>, vector<1x4x256xf32>
    tpu.vector_store %arg3[%c0_13, %c0_14, %c0_15], %29 {strides = array<i32>} : memref<1x4x256xf32, #tpu.memory_space<vmem>>, vector<1x4x256xf32>,
    return
  }
  func.func @transform_0(%arg0: i32) -> (i32, i32, i32) {
    %c0_i32 = arith.constant 0 : i32
    %c0_i32_0 = arith.constant 0 : i32
    %c0_i32_1 = arith.constant 0 : i32
    return %arg0, %c0_i32, %c0_i32_0 : i32, i32, i32
  }
  func.func @transform_1(%arg0: i32) -> (i32, i32, i32) {
    %c0_i32 = arith.constant 0 : i32
    %c0_i32_0 = arith.constant 0 : i32
    %c0_i32_1 = arith.constant 0 : i32
    %c0_i32_2 = arith.constant 0 : i32
    return %c0_i32, %c0_i32_0, %c0_i32_1 : i32, i32, i32
  }
  func.func @transform_2(%arg0: i32) -> (i32, i32, i32) {
    %c0_i32 = arith.constant 0 : i32
    %c0_i32_0 = arith.constant 0 : i32
    %c0_i32_1 = arith.constant 0 : i32
    return %arg0, %c0_i32, %c0_i32_0 : i32, i32, i32
  }
}

</mosaic_0001>

<bundles_post_ra>
// kernel: tpu_custom_call.1
= control target key start
LH: loop header
LB: loop body
LE: loop exit
PB: predicated region body
PF: predicated region fallthrough
CT: control target
= control target key end

     0   :  { %7 = vsyncpa [#allocation3], 0  ;;  %s638_s0 = inlined_call_operand.hbm [shape: f32[2,4,256], index: 0, kind: input, shape index: {}]   ;;  %s639_s1 = inlined_call_operand.vmem [shape: f32[3,4,1], index: 1, kind: input, shape index: {}]   ;;  %s640_s2 = inlined_call_operand.hbm [shape: f32[2,4,256], index: 2, kind: output, shape index: {}]  }
   0x1   :  { %9 = vsyncpa [#allocation3 + $0x1], 0 }
   0x2   :  { %10 = vsyncpa [#allocation4], 0 }
   0x3   :  { %12 = vsyncpa [#allocation4 + $0x1], 0  ;;  %s484_s9 = smov 0   ;;  %s486_s10 = smov 0  }
   0x4   :  { %s488_s11 = smov 0   ;;  %s490_s12 = smov 0  }
   0x5 LB: > { %s505_s13 = sadd.s32 4294967295, %s463_s12   ;;  %s300_s14 = sadd.s32 4294967294, %s463_s12   ;;  %s463_s12 = sphi %s490_s12, %s657_s12   ;;  %s459_s11 = sphi %s488_s11, %s656_s11   ;;  %s455_s10 = sphi %s486_s10, %s655_s10   ;;  %s451_s9 = sphi %s484_s9, %s654_s9  }
   0x6   : > { %s509_s15 = sadd.s32 1, %s463_s12   ;;  %s25_s16 = sadd.s32 1, %s459_s11 }
   0x7   : > { %s22_s17 = ssub.s32 %s463_s12, %s509_s15  ;;  %p32_p0 = scmp.ne.s32.totalorder %s459_s11, %s455_s10 }
   0x8   : > { %p23_p1 = scmp.eq.s32.totalorder %s22_s17, 0  ;;  %p33_p2 = scmp.eq.s32.totalorder %s463_s12, 0 }
   0x9   : > { %p38_p3 = scmp.ne.s32.totalorder %s455_s10, %s451_s9  ;;  %p39_p4 = scmp.eq.s32.totalorder %s505_s13, 0 }
   0xa   : > { %s521_s18 = scalar_select %p23_p1, %s459_s11, %s25_s16  }
   0xb   : > { %p523_p5 = por %p33_p2, %p32_p0  ;;  %p527_p6 = por %p39_p4, %p38_p3 }
   0xc   : > { %p83_p7 = scmp.eq.s32.totalorder %s505_s13, 1  ;;  %p89_p8 = scmp.eq.s32.totalorder %s300_s14, 1 }
   0xd   : > { %s644_s20 = scalar_select %p527_p6, 1, 0 }
   0xe   : > { %p328_p10 = scmp.lt.s32.totalorder %s463_s12, 2  ;;  %p534_p11 = por %p83_p7, %p32_p0 }
   0xf   : > { %p538_p12 = por %p89_p8, %p38_p3  ;;  %s112_s23 = sand.u32 1, %s459_s11  }
  0x10   : > { %s645_s21 = scalar_select %p534_p11, 1, 0 }
  0x11   : > { %s646_s22 = scalar_select %p538_p12, 1, 0 }
  0x12   : > { %s314_s24 = sshll.u32 %s463_s12, 7  ;;  %s303_s25 = sshll.u32 %s112_s23, 3 }
  0x13   : > { %s547_s28 = scalar_lea.hbm %s638_s0, %s314_s24  ;;  %s116_s29 = scalar_lea.vmem [#allocation2], %s303_s25 }
  0x14   : > { %s124_s30 = sshll.u32 %s116_s29, 4  ;;  %p551_p13 = pnand %p328_p10, %p523_p5  ;;  %s555_s30 = int_to_ptr.vmem [resolvable:$true] %s124_s30 }
  0x15   : > { %s113_s4 = scalar_lea.sflag [#allocation3], %s112_s23  ;;  %s371_s5 = scalar_lea.hbm %s547_s28, 128 }
  0x16   : > { %p372_p2 = scmp.ne.s32.totalorder %s547_s28, %s371_s5  ;;  %p373_p3 = pneg %p551_p13 }
  0x17   : > { %s376_s8 = scalar_lea.hbm %s638_s0, 256  ;;  %p377_p5 = scmp.lt.s32.totalorder %s547_s28, %s638_s0 }
  0x18   : > { %p374_p4 = pnand %p373_p3, %p372_p2  ;;  %p378_p8 = scmp.lt.s32.totalorder %s376_s8, %s371_s5 }
  0x1a   : > { %p375_p7 = pneg %p374_p4  ;;  %p379_p10 = por %p378_p8, %p377_p5 }
  0x1c   : > { %p380_p9 = pnand %p379_p10, %p375_p7 }
  0x1e   : > { %383 = shalt.err (!%p380_p9)
}
  0x1f   : > { %s384_s17 = scalar_lea.vmem %s555_s30, 128  ;;  %s465_s19 = smov [#allocation2]  }
  0x20   : > { %p385_p0 = scmp.ne.s32.totalorder %s555_s30, %s384_s17  ;;  %s389_s23 = sshll.u32 %s465_s19, 4  ;;  %s390_s23 = int_to_ptr.vmem [resolvable:$false] %s389_s23 }
  0x21   : > { %s391_s24 = scalar_lea.vmem %s390_s23, 256  ;;  %p392_p4 = scmp.lt.s32.totalorder %s555_s30, %s390_s23 }
  0x22   : > { %p387_p1 = pnand %p385_p0, %p373_p3  ;;  %p393_p12 = scmp.lt.s32.totalorder %s391_s24, %s384_s17 }
  0x24   : > { %p388_p2 = pneg %p387_p1  ;;  %p394_p11 = por %p393_p12, %p392_p4 }
  0x26   : > { %p395_p6 = pnand %p394_p11, %p388_p2 }
  0x28   : > { %398 = shalt.err (!%p395_p6)
}
  0x29   : > { %323 = dma.hbm_to_vmem [thread:$0]  (!%p551_p13), %s547_s28, 128, %s555_s30, %s113_s4  }
  0x2a   : > { %p648_p9 = scmp.lt.s32.totalorder %s463_s12, 3  ;;  %p649_p7 = scmp.ge.s32.totalorder %s463_s12, 1 }
  0x2c   : > { %p130_p0 = pnand %p649_p7, %p648_p9 }
  0x2d   : > { %s582_s25 = sand.u32 (!%p130_p0), 1, %s455_s10   ;;  %p650_p6 = scmp.ne.s32.totalorder (!%p130_p0), %s644_s20, 0 }
  0x2e   : > { %133 = sbr.rel (%p130_p0) target bundleno = 416 (0x1a0), region = 28  ;;  %s307_s26 = sshll.u32 (!%p130_p0), %s582_s25, 3 }
  0x2f   : > { %s136_s27 = scalar_lea.sflag (!%p130_p0), [#allocation3], %s582_s25  ;;  %s139_s29 = scalar_lea.vmem (!%p130_p0), [#allocation2], %s307_s26 }
  0x33   : > { %442 = dma.done.wait (%p650_p6), %s136_s27, 128  }
  0x34   : > { %444 = vsyncadd (%p650_p6), %s136_s27, 4294967168  ;;  %v163_v0 = vld [vmem:[%s139_s29] sm:$0xff]  ;;  %vm168_vm0 = vcmask 1043456   ;;  %v466_v6 = vmov 0   ;;  %vm184_vm3 = vcmask 3072   ;;  %v208_v36 = vlaneseq  ;;  %s315_s6 = sshll.u32 %s505_s13, 7 }
  0x35   : > { %v164_v1 = vmul.f32 %v163_v0, %v163_v0  ;;  %364 = vset.pattern.permute.xlu0 %v466_v6  ;;  %v160_v11 = vld [vmem:[%s639_s1] sm:$0xf]  ;;  %v161_v26 = vld [vmem:[%s639_s1 + $0x4] sm:$0xf]  ;;  %v162_v29 = vld [vmem:[%s639_s1 + $0x8] sm:$0xf]  ;;  %s228_s17 = scalar_lea.hbm %s640_s2, %s315_s6 }
  0x36   : > { %v467_v34 = vmov 839922192   ;;  %v209_v38 = vshrl.u32 %v208_v36, 7  ;;  %s159_s7 = scalar_lea.vmem [#allocation5], %s307_s26  ;;  %s216_s19 = scalar_lea.sflag [#allocation4], %s582_s25 }
  0x37   : > { %v166_v2 = vcombine.high %v164_v1, %v164_v1  ;;  %v169_v3 = vsel %vm168_vm0, %v164_v1, 0.0  ;;  %v206_v35 = vunpack.c.l.s4 %v467_v34  ;;  %s230_s8 = sshll.u32 %s159_s7, 4  ;;  %p651_p12 = scmp.ne.s32.totalorder %s645_s21, 0  ;;  %s231_s8 = int_to_ptr.vmem [resolvable:$true] %s230_s8 }
  0x38   : > { %s399_s23 = scalar_lea.vmem %s231_s8, 128  ;;  %s468_s24 = smov [#allocation5]  }
  0x39   : > { %v170_v4 = vsel %vm168_vm0, %v166_v2, 0.0  ;;  %v207_v37 = vunpack.c.0.s8 %v206_v35  ;;  %p400_p11 = scmp.ne.s32.totalorder %s231_s8, %s399_s23  ;;  %s403_s27 = sshll.u32 %s468_s24, 4  ;;  %s404_s27 = int_to_ptr.vmem [resolvable:$false] %s403_s27 }
  0x3a   : > { %v171_v5 = vadd.f32 %v170_v4, %v169_v3  ;;  %s405_s13 = scalar_lea.vmem %s404_s27, 256  ;;  %p406_p3 = scmp.lt.s32.totalorder %s231_s8, %s404_s27 }
  0x3b   : > { %v210_v39 = vsub.s32 %v207_v37, %v209_v38  ;;  %p401_p13 = pnand %p400_p11, %p651_p12  ;;  %p407_p5 = scmp.lt.s32.totalorder %s405_s13, %s399_s23 }
  0x3c   : > { %172 = vadd.xlane.f32.xlu0 %v171_v5 }
  0x3d   : > { %p402_p1 = pneg %p401_p13  ;;  %p408_p8 = por %p407_p5, %p406_p3 }
  0x3f   : > { %p409_p10 = pnand %p408_p8, %p402_p1 }
  0xc5   : > { %v173_v7 = vpop.xlane.xlu0 %172 }
  0xc6   : > { %v174_v8 = vadd.f32 1e-05, %v173_v7 }
  0xc8   : > { %365 = vrsqrt.f32 %v174_v8  ;;  %vm177_vm1 = vcmp.eq.f32.partialorder %v174_v8, inf  ;;  %v180_v12 = vand.u32 2147483648, %v174_v8  ;;  %vm179_vm2 = vcmp.eq.f32.partialorder %v174_v8, 0.0 }
  0xd5   : > { %v366_v9 = vpop.eup %365 }
  0xd6   : > { %v176_v10 = vmul.f32 %v366_v9, %v174_v8 }
  0xd8   : > { %v178_v13 = vsel %vm177_vm1, %v174_v8, %v176_v10 }
  0xd9   : > { %v181_v14 = vsel %vm179_vm2, %v180_v12, %v178_v13 }
  0xda   : > { %v182_v15 = vmul.f32 %v181_v14, %v160_v11 }
  0xdc   : > { %v183_v16 = vmul.f32 %v182_v15, %v182_v15 }
  0xde   : > { %v185_v17 = vsel %vm184_vm3, %v183_v16, 0.0 }
  0xdf   : > { %v186_v18 = vrot.slane %v185_v17, 4 }
  0xe1   : > { %v187_v19 = vadd.f32 %v186_v18, %v185_v17 }
  0xe3   : > { %v188_v20 = vrot.slane %v187_v19, 2 }
  0xe5   : > { %v189_v21 = vadd.f32 %v188_v20, %v187_v19 }
  0xe7   : > { %v190_v22 = vrot.slane %v189_v21, 1 }
  0xe9   : > { %v191_v23 = vadd.f32 %v190_v22, %v189_v21 }
  0xeb   : > { %v193_v24 = vmul.f32 0.25, %v191_v23 }
  0xed   : > { %v194_v25 = vadd.f32 1e-05, %v193_v24 }
  0xef   : > { %367 = vrsqrt.f32 %v194_v25 }
  0xfc   : > { %v368_v27 = vpop.eup %367 }
  0xfd   : > { %v196_v28 = vmul.f32 %v368_v27, %v161_v26 }
  0xff   : > { %v197_v30 = vmul.f32 %v196_v28, %v182_v15 }
 0x101   : > { %v198_v31 = vadd.f32 %v197_v30, %v162_v29 }
 0x103   : > { %369 = vtanh.f32 %v198_v31 }
 0x110   : > { %v370_v32 = vpop.eup %369 }
 0x111   : > { %v200_v33 = vadd.f32 1.0, %v370_v32 }
 0x113   : > { %203 = vperm.xlu0 %364, %v200_v33  }
 0x18e   : > { %v204_v40 = vpop.permute.xlu0 %203 }
 0x18f   : > { %v211_v41 = vrot.slane %v204_v40, %v210_v39 }
 0x191   : > { %v213_v42 = vmul.f32 %v211_v41, %v163_v0 }
 0x193   : > { %214 = vst [vmem:[%s159_s7] sm:$0xff] %v213_v42 }
 0x194   : > { %412 = shalt.err (!%p409_p10)
}
 0x195   : > { %s413_s26 = scalar_lea.hbm %s228_s17, 128  ;;  %s417_s28 = scalar_lea.hbm %s640_s2, 256 }
 0x196   : > { %p414_p2 = scmp.ne.s32.totalorder %s228_s17, %s413_s26  ;;  %p418_p7 = scmp.lt.s32.totalorder %s228_s17, %s640_s2 }
 0x197   : > { %p419_p0 = scmp.lt.s32.totalorder %s417_s28, %s413_s26 }
 0x198   : > { %p415_p4 = pnand %p414_p2, %p651_p12 }
 0x199   : > { %p420_p6 = por %p419_p0, %p418_p7 }
 0x19a   : > { %p416_p9 = pneg %p415_p4 }
 0x19c   : > { %p421_p11 = pnand %p420_p6, %p416_p9 }
 0x19e   : > { %424 = shalt.err (!%p421_p11)
}
 0x19f   : > { %318 = dma.vmem_to_hbm [thread:$0]  (%p651_p12), %s231_s8, 128, %s228_s17, %s216_s19  }
 0x1a0 PF: > { %s242_s3 = sand.u32 1, %s451_s9   ;;  %p652_p13 = scmp.ne.s32.totalorder %s646_s22, 0 }
 0x1a1   : > { %p653_p1 = scmp.ge.s32.totalorder %s463_s12, 2  ;;  %s243_s4 = scalar_lea.sflag [#allocation4], %s242_s3 }
 0x1a3   : > { %p325_p3 = pnand %p653_p1, %p652_p13 }
 0x1a5   : > { %p326_p5 = pneg %p325_p3 }
 0x1a7   : > { %446 = dma.done.wait (%p326_p5), %s243_s4, 128  }
 0x1a8   : > { %448 = vsyncadd (%p326_p5), %s243_s4, 4294967168  ;;  %p15_p8 = scmp.ge.s32.totalorder %s509_s15, 4   ;;  %s654_s9 = smov %s455_s10 }
 0x1a9   : > { %s655_s10 = smov %s459_s11  ;;  %s656_s11 = smov %s521_s18 }
 0x1aa   : > { %s657_s12 = smov %s509_s15  ;;  %17 = sbr.rel (!%p15_p8) target bundleno = 5 (0x5), region = 73 }
 0x1af   :  { %248 = vsyncpa [#allocation3], 1 }
 0x1b0   :  { %250 = vsyncpa [#allocation3 + $0x1], 1 }
 0x1b1   :  { %251 = vsyncpa [#allocation4], 1 }
 0x1b2   :  { %253 = vsyncpa [#allocation4 + $0x1], 1 }

</bundles_post_ra>
